<compile_context>
chip_gen: v5e
topology: v5e:2x2
jax: 0.10.0
libtpu: 0.0.40
codegen_flags: <defaults>
</compile_context>

<pallas_src>
import jax
import jax.numpy as jnp
from jax.experimental import pallas as pl
from jax.experimental.pallas import tpu as pltpu


def nsgm_kernel(x_ref, w1_ref, b1_ref, w2t_ref, b2_ref, o_ref):
    # x_ref:  (TB, T*V)   flattened (time, var) block of the input
    # w1_ref: (T*V, H)    pre-fused, pre-tiled  tile((W1 @ A).T / T, (T, 1))
    # b1_ref: (1, H)
    # w2t_ref:(H, V)      pre-transposed W2
    # b2_ref: (1, V)
    # o_ref:  (TB, V)
    h = jnp.dot(x_ref[...], w1_ref[...], preferred_element_type=jnp.float32)   # (TB, H)
    h = jnp.maximum(h + b1_ref[...], 0.0)
    out = jnp.dot(h, w2t_ref[...], preferred_element_type=jnp.float32)         # (TB, V)
    o_ref[...] = (out + b2_ref[...]).astype(o_ref.dtype)


def _choose_tile_b(B, T, V, H, vmem_limit_bytes):
    """Pick the batch tile from the VMEM budget (double-buffered in/out + weights)."""
    lane, f32 = 128, 4
    pad = lambda n: ((n + lane - 1) // lane) * lane
    x_row_bytes = pad(T * V) * f32
    out_row_bytes = pad(V) * f32
    weight_bytes = ((T * V) * pad(H) + pad(H) + H * pad(V) + pad(V)) * f32
    budget = vmem_limit_bytes // 2 - weight_bytes          # leave half the limit as headroom
    per_row = 2 * x_row_bytes + 2 * out_row_bytes          # 2x-buffered input + output rows
    tb = max((budget // per_row) // 8 * 8, 8)              # sublane-aligned tile rows
    if tb >= B:
        return B                                            # one block covers the whole batch
    return int(tb)


def nsgm_forward(X, A, W1, b1, W2, b2, *, vmem_limit_bytes=32 * 1024 * 1024):
    B, T, V = X.shape
    H = W1.shape[0]

    # Host-side algebraic fusion:
    #   mean_t(X) @ A.T @ W1.T == (sum_t X) @ ((W1 @ A).T / T)
    #                          == reshape(X, (B, T*V)) @ tile((W1 @ A).T / T, (T, 1))
    w1_fused_t = jnp.matmul(W1, A, precision=jax.lax.Precision.HIGHEST).T / T   # (V, H)
    w1_big = jnp.tile(w1_fused_t, (T, 1))                                       # (T*V, H)
    w2_t = W2.T                                                                 # (H, V)
    b1_2d = b1.reshape(1, H)
    b2_2d = b2.reshape(1, V)
    x2d = X.reshape(B, T * V)                                                   # contiguous -> free

    tb = _choose_tile_b(B, T, V, H, vmem_limit_bytes)
    grid = (pl.cdiv(B, tb),)

    return pl.pallas_call(
        nsgm_kernel,
        out_shape=jax.ShapeDtypeStruct((B, V), jnp.float32),
        grid_spec=pltpu.PrefetchScalarGridSpec(
            num_scalar_prefetch=0,
            grid=grid,
            in_specs=[
                pl.BlockSpec((tb, T * V), lambda i: (i, 0)),   # X: tiled over batch only
                pl.BlockSpec((T * V, H), lambda i: (0, 0)),    # fused+tiled W1
                pl.BlockSpec((1, H), lambda i: (0, 0)),        # b1
                pl.BlockSpec((H, V), lambda i: (0, 0)),        # W2.T
                pl.BlockSpec((1, V), lambda i: (0, 0)),        # b2
            ],
            out_specs=pl.BlockSpec((tb, V), lambda i: (i, 0)),
        ),
        compiler_params=pltpu.CompilerParams(
            dimension_semantics=("parallel",),       # batch tiles -> both TCs on v7x
            vmem_limit_bytes=vmem_limit_bytes,       # 32 MiB is safe on v5e/v6e/v7x
        ),
    )(x2d, w1_big, b1_2d, w2_t, b2_2d)


def nsgm_reference(X, A, W1, b1, W2, b2):
    z = jnp.mean(X, axis=1)
    u = z @ A.T
    h = jnp.maximum(u @ W1.T + b1, 0.0)
    return h @ W2.T + b2


if __name__ == "__main__":
    num_vars = 8
    hidden_dim = 32
    batch = 2
    seq = 8

    key = jax.random.PRNGKey(0)
    kX, kA, kW1, kb1, kW2, kb2 = jax.random.split(key, 6)

    # Deterministic synthetic parameters (shapes match the torch module).
    X = jax.random.normal(kX, (batch, seq, num_vars), dtype=jnp.float32)
    A = jax.random.normal(kA, (num_vars, num_vars), dtype=jnp.float32) * 0.01
    W1 = jax.random.normal(kW1, (hidden_dim, num_vars), dtype=jnp.float32) * 0.1
    b1 = jax.random.normal(kb1, (hidden_dim,), dtype=jnp.float32) * 0.1
    W2 = jax.random.normal(kW2, (num_vars, hidden_dim), dtype=jnp.float32) * 0.1
    b2 = jax.random.normal(kb2, (num_vars,), dtype=jnp.float32) * 0.1

    out = nsgm_forward(X, A, W1, b1, W2, b2)
    out = jax.block_until_ready(out)

    ref = nsgm_reference(X, A, W1, b1, W2, b2)
    assert out.shape == (batch, num_vars)
    assert jnp.allclose(out, ref, atol=1e-4, rtol=1e-4), (
        f"max abs diff = {jnp.max(jnp.abs(out - ref))}"
    )

    print("KERNEL_OK")
</pallas_src>

<mosaic_0001>
module attributes {stable_mosaic.version = 11 : i64} {
  func.func @nsgm_kernel(%arg0: i32, %arg1: memref<2x64xf32, #tpu.memory_space<vmem>>, %arg2: memref<64x32xf32, #tpu.memory_space<vmem>>, %arg3: memref<1x32xf32, #tpu.memory_space<vmem>>, %arg4: memref<32x8xf32, #tpu.memory_space<vmem>>, %arg5: memref<1x8xf32, #tpu.memory_space<vmem>>, %arg6: memref<2x8xf32, #tpu.memory_space<vmem>>) attributes {dimension_semantics = [#tpu.dimension_semantics<parallel>], iteration_bounds = array<i64: 1>, scalar_prefetch = 0 : i64, scratch_operands = 0 : i64, tpu.core_type = #tpu.core_type<tc>, window_params = [{transform_indices = @transform_0, window_bounds = array<i64: 2, 64>}, {pipeline_mode = #tpu.pipeline_mode<synchronous>, transform_indices = @transform_1, window_bounds = array<i64: 64, 32>}, {pipeline_mode = #tpu.pipeline_mode<synchronous>, transform_indices = @transform_2, window_bounds = array<i64: 1, 32>}, {pipeline_mode = #tpu.pipeline_mode<synchronous>, transform_indices = @transform_3, window_bounds = array<i64: 32, 8>}, {pipeline_mode = #tpu.pipeline_mode<synchronous>, transform_indices = @transform_4, window_bounds = array<i64: 1, 8>}, {transform_indices = @transform_5, window_bounds = array<i64: 2, 8>}]} {
    %c0 = arith.constant 0 : index
    %c0_0 = arith.constant 0 : index
    %0 = vector.load %arg1[%c0, %c0_0] : memref<2x64xf32, #tpu.memory_space<vmem>>, vector<2x64xf32>
    %c0_1 = arith.constant 0 : index
    %c0_2 = arith.constant 0 : index
    %1 = vector.load %arg2[%c0_1, %c0_2] : memref<64x32xf32, #tpu.memory_space<vmem>>, vector<64x32xf32>
    %cst = arith.constant dense<0.000000e+00> : vector<2x32xf32>
    %2 = tpu.matmul %0, %1, %cst {dimension_numbers = #tpu.dot_dimension_numbers<[1], [0], [0], [1], [0, 0, 1, 1], [], []>} : vector<2x64xf32>, vector<64x32xf32>, vector<2x32xf32> -> vector<2x32xf32>
    %c0_3 = arith.constant 0 : index
    %c0_4 = arith.constant 0 : index
    %3 = vector.load %arg3[%c0_3, %c0_4] : memref<1x32xf32, #tpu.memory_space<vmem>>, vector<1x32xf32>
    %4 = vector.broadcast %3 : vector<1x32xf32> to vector<2x32xf32>
    %5 = arith.addf %2, %4 : vector<2x32xf32>
    %cst_5 = arith.constant 0.000000e+00 : f32
    %6 = vector.broadcast %cst_5 : f32 to vector<2x32xf32>
    %7 = arith.maximumf %5, %6 : vector<2x32xf32>
    %c0_6 = arith.constant 0 : index
    %c0_7 = arith.constant 0 : index
    %8 = vector.load %arg4[%c0_6, %c0_7] : memref<32x8xf32, #tpu.memory_space<vmem>>, vector<32x8xf32>
    %cst_8 = arith.constant dense<0.000000e+00> : vector<2x8xf32>
    %9 = tpu.matmul %7, %8, %cst_8 {dimension_numbers = #tpu.dot_dimension_numbers<[1], [0], [0], [1], [0, 0, 1, 1], [], []>} : vector<2x32xf32>, vector<32x8xf32>, vector<2x8xf32> -> vector<2x8xf32>
    %c0_9 = arith.constant 0 : index
    %c0_10 = arith.constant 0 : index
    %10 = vector.load %arg5[%c0_9, %c0_10] : memref<1x8xf32, #tpu.memory_space<vmem>>, vector<1x8xf32>
    %11 = vector.broadcast %10 : vector<1x8xf32> to vector<2x8xf32>
    %12 = arith.addf %9, %11 : vector<2x8xf32>
    %c0_11 = arith.constant 0 : index
    %c0_12 = arith.constant 0 : index
    %13 = vector.load %arg6[%c0_11, %c0_12] : memref<2x8xf32, #tpu.memory_space<vmem>>, vector<2x8xf32>
    tpu.vector_store %arg6[%c0_11, %c0_12], %12 {strides = array<i32>} : memref<2x8xf32, #tpu.memory_space<vmem>>, vector<2x8xf32>,
    return
  }
  func.func @transform_0(%arg0: i32) -> (i32, i32) {
    %c0_i32 = arith.constant 0 : i32
    %c0_i32_0 = arith.constant 0 : i32
    return %arg0, %c0_i32 : i32, i32
  }
  func.func @transform_1(%arg0: i32) -> (i32, i32) {
    %c0_i32 = arith.constant 0 : i32
    %c0_i32_0 = arith.constant 0 : i32
    %c0_i32_1 = arith.constant 0 : i32
    return %c0_i32, %c0_i32_0 : i32, i32
  }
  func.func @transform_2(%arg0: i32) -> (i32, i32) {
    %c0_i32 = arith.constant 0 : i32
    %c0_i32_0 = arith.constant 0 : i32
    %c0_i32_1 = arith.constant 0 : i32
    return %c0_i32, %c0_i32_0 : i32, i32
  }
  func.func @transform_3(%arg0: i32) -> (i32, i32) {
    %c0_i32 = arith.constant 0 : i32
    %c0_i32_0 = arith.constant 0 : i32
    %c0_i32_1 = arith.constant 0 : i32
    return %c0_i32, %c0_i32_0 : i32, i32
  }
  func.func @transform_4(%arg0: i32) -> (i32, i32) {
    %c0_i32 = arith.constant 0 : i32
    %c0_i32_0 = arith.constant 0 : i32
    %c0_i32_1 = arith.constant 0 : i32
    return %c0_i32, %c0_i32_0 : i32, i32
  }
  func.func @transform_5(%arg0: i32) -> (i32, i32) {
    %c0_i32 = arith.constant 0 : i32
    %c0_i32_0 = arith.constant 0 : i32
    return %arg0, %c0_i32 : i32, i32
  }
}

</mosaic_0001>

<bundles_post_ra>
// kernel: tpu_custom_call.1
= control target key start
LH: loop header
LB: loop body
LE: loop exit
PB: predicated region body
PF: predicated region fallthrough
CT: control target
= control target key end

     0   :  { %s219_s0 = inlined_call_operand.vmem [shape: f32[2,64], index: 0, kind: input, shape index: {}]   ;;  %s220_s1 = inlined_call_operand.vmem [shape: f32[64,32], index: 1, kind: input, shape index: {}]   ;;  %s221_s2 = inlined_call_operand.vmem [shape: f32[1,32], index: 2, kind: input, shape index: {}]   ;;  %s222_s3 = inlined_call_operand.vmem [shape: f32[32,8], index: 3, kind: input, shape index: {}]   ;;  %s223_s4 = inlined_call_operand.vmem [shape: f32[1,8], index: 4, kind: input, shape index: {}]   ;;  %s224_s5 = inlined_call_operand.hbm [shape: f32[2,8], index: 5, kind: output, shape index: {}]  }
   0x1   :  { %v29_v0 = vld [vmem:[%s220_s1 + $0x38] sm:$0xff]  ;;  %v28_v1 = vld [vmem:[%s220_s1 + $0x30] sm:$0xff]  ;;  %v27_v2 = vld [vmem:[%s220_s1 + $0x28] sm:$0xff] }
   0x2   :  { %46 = vmatpush.msra.mxu0 %v29_v0  ;;  %v62_v3 = vld [vmem:[%s222_s3 + $0x18] sm:$0xff]  ;;  %v26_v4 = vld [vmem:[%s220_s1 + $0x20] sm:$0xff] }
   0x3   :  { %83 = vmatpush.msra.mxu1 %v62_v3 }
   0x4   :  { %47 = vmatpush.msra.mxu0 %v28_v1 }
   0x5   :  { %10 = vsyncpa [#allocation3], 0  ;;  %v25_v5 = vld [vmem:[%s220_s1 + $0x18] sm:$0xff]  ;;  %v24_v6 = vld [vmem:[%s220_s1 + $0x10] sm:$0xff]  ;;  %vm34_vm0 = vcmask 523264   ;;  %vm67_vm1 = vcmask 261120  }
   0x6   :  { %48 = vmatpush.msra.mxu0 %v27_v2  ;;  %v23_v7 = vld [vmem:[%s220_s1 + $0x8] sm:$0xff]  ;;  %v22_v8 = vld [vmem:[%s220_s1] sm:$0xff]  ;;  %v61_v10 = vld [vmem:[%s222_s3 + $0x10] sm:$0xff]  ;;  %s140_s21 = smov [#allocation2]   ;;  %vm91_vm2 = vcmask 58368  }
   0x7   :  { %v21_v9 = vld [vmem:[%s219_s0] sm:$0x3]  ;;  %84 = vmatpush.msra.mxu1 %v61_v10  ;;  %v60_v11 = vld [vmem:[%s222_s3 + $0x8] sm:$0xff]  ;;  %s98_s22 = sshll.u32 %s140_s21, 4  ;;  %s99_s22 = int_to_ptr.vmem [resolvable:$true] %s98_s22 }
   0x8   :  { %49 = vmatpush.msra.mxu0 %v26_v4  ;;  %v59_v12 = vld [vmem:[%s222_s3] sm:$0xff]  ;;  %s100_s3 = sshll.u32 %s224_s5, 4  ;;  %s101_s3 = int_to_ptr.hbm [resolvable:$true] %s100_s3 }
   0x9   :  { %85 = vmatpush.msra.mxu1 %v60_v11  ;;  %v112_v13 = vld [vmem:[%s221_s2] ss:$0 sm:$0xff] }
   0xa   :  { %50 = vmatpush.msra.mxu0 %v25_v5  ;;  %v113_v17 = vld [vmem:[%s223_s4] ss:$0 sm:$0xff] }
   0xb   :  { %86 = vmatpush.msra.mxu1 %v59_v12 }
   0xc   :  { %51 = vmatpush.msra.mxu0 %v24_v6 }
   0xe   :  { %52 = vmatpush.msra.mxu0 %v23_v7 }
  0x10   :  { %53 = vmatpush.msra.mxu0 %v22_v8 }
  0x11   :  { %109 = vmatmul.msk.f32.vlgmr.msra.gmra.mxu0 %vm34_vm0, %v21_v9 }
  0x8e   :  { %v55_v14 = vpop.f32.mrf.mxu0 }
  0x8f   :  { %v56_v15 = vadd.f32 %v112_v13, %v55_v14 }
  0x91   :  { %v58_v16 = vmax.f32 %v56_v15, 0.0 }
  0x93   :  { %110 = vmatmul.msk.f32.vlgmr.msra.gmra.mxu1 %vm67_vm1, %v58_v16 }
 0x110   :  { %v88_v18 = vpop.f32.mrf.mxu1 }
 0x111   :  { %v89_v19 = vadd.f32 %v113_v17, %v88_v18 }
 0x113   :  { %92 = vst.msk [vmem:[#allocation2] sm:$0x3] %vm91_vm2, %v89_v19 }
 0x114   :  { %103 = dma.vmem_to_hbm [thread:$0]  %s99_s22, 32, %s101_s3, [#allocation3]  }
 0x115   :  { %138 = dma.done.wait [#allocation3], 32  }
 0x116   :  { %139 = vsyncadd [#allocation3], 4294967264 }
 0x117   :  { %108 = vsyncpa [#allocation3], 1 }

</bundles_post_ra>
